<compile_context>
chip_gen: v7x
topology: tpu7x:2x2x1
jax: 0.10.0
libtpu: 0.0.40
codegen_flags: <defaults>
</compile_context>

<pallas_src>
import jax
import jax.numpy as jnp
from jax.experimental import pallas as pl
from jax.experimental.pallas import tpu as pltpu


def mlp_kernel(x_ref, w1_ref, b1_ref, w2_ref, b2_ref, o_ref):
    """One batch tile, fully VPU/XLU (no MXU for the degenerate K=1 / O=1 dots).

    Transposed, lane-dense layout (batch on lanes, hidden on sublanes):
      x_ref : (F, T)   input features x batch-tile
      w1_ref: (H, F)   hidden-layer weight
      b1_ref: (H, 1)   hidden-layer bias
      w2_ref: (H, O)   output-layer weight
      b2_ref: (O, 1)   output-layer bias
      o_ref : (O, T)   output tile (T is a multiple of 128 -> unmasked stores)
    """
    x = x_ref[...]
    w1 = w1_ref[...]

    # hidden(x): outer-product via VPU broadcast multiplies (n_feature is tiny,
    # loop unrolled at trace time).
    h = b1_ref[...]                                   # (H, 1) -> broadcasts to (H, T)
    for f in range(x.shape[0]):
        h = h + w1[:, f:f + 1] * x[f:f + 1, :]
    h = jnp.maximum(h, 0.0)                           # ReLU on the VPU

    # predict(h): VPU multiply + sublane (XLU) reduce per output unit.
    w2 = w2_ref[...]
    b2 = b2_ref[...]
    for o in range(o_ref.shape[0]):
        y = jnp.sum(h * w2[:, o:o + 1], axis=0, keepdims=True) + b2[o:o + 1, :]
        o_ref[o:o + 1, :] = y.astype(o_ref.dtype)


def net_forward(x, w1, b1, w2, b2, *, max_tile_n=512):
    """Forward pass of Net: predict(relu(hidden(x))).

    x : (N, F); w1: (F, H); b1: (1, H); w2: (H, O); b2: (1, O).  Returns (N, O) f32.
    """
    n, f_dim = x.shape
    h_dim = w1.shape[1]
    o_dim = w2.shape[1]

    # Lane-aligned batch tile; pad N up so every tile is full and lane-dense.
    tile_n = min(max_tile_n, ((n + 127) // 128) * 128)
    n_pad = ((n + tile_n - 1) // tile_n) * tile_n
    grid = (n_pad // tile_n,)

    # Wrapper-side layout plumbing (tiny arrays, handled by XLA outside the kernel).
    x_t = jnp.pad(x.T.astype(jnp.float32), ((0, 0), (0, n_pad - n)))   # (F, n_pad)
    w1_t = w1.T.astype(jnp.float32)                                    # (H, F)
    b1_t = b1.reshape(h_dim, 1).astype(jnp.float32)                    # (H, 1)
    w2_t = w2.astype(jnp.float32)                                      # (H, O)
    b2_t = b2.reshape(o_dim, 1).astype(jnp.float32)                    # (O, 1)

    const = lambda i: (0, 0)   # weights/biases: same block every step -> VMEM-resident
    out_t = pl.pallas_call(
        mlp_kernel,
        out_shape=jax.ShapeDtypeStruct((o_dim, n_pad), jnp.float32),
        grid=grid,
        in_specs=[
            pl.BlockSpec((f_dim, tile_n), lambda i: (0, i)),   # x: streamed per tile
            pl.BlockSpec((h_dim, f_dim), const),
            pl.BlockSpec((h_dim, 1), const),
            pl.BlockSpec((h_dim, o_dim), const),
            pl.BlockSpec((o_dim, 1), const),
        ],
        out_specs=pl.BlockSpec((o_dim, tile_n), lambda i: (0, i)),
        compiler_params=pltpu.CompilerParams(
            dimension_semantics=("parallel",),   # shard batch tiles across TCs (v7x)
        ),
    )(x_t, w1_t, b1_t, w2_t, b2_t)

    return out_t[:, :n].T                                              # (N, O)


def init_params(key, n_feature, n_hidden, n_output):
    # Deterministic synthetic init (mimics torch.nn.Linear uniform fan-in init).
    k1, k2, k3, k4 = jax.random.split(key, 4)
    lim1 = 1.0 / jnp.sqrt(n_feature)
    lim2 = 1.0 / jnp.sqrt(n_hidden)
    w1 = jax.random.uniform(k1, (n_feature, n_hidden), jnp.float32, -lim1, lim1)
    b1 = jax.random.uniform(k2, (1, n_hidden), jnp.float32, -lim1, lim1)
    w2 = jax.random.uniform(k3, (n_hidden, n_output), jnp.float32, -lim2, lim2)
    b2 = jax.random.uniform(k4, (1, n_output), jnp.float32, -lim2, lim2)
    return w1, b1, w2, b2


def net_reference(x, w1, b1, w2, b2):
    # Plain-JAX reference with full-precision dots (kernel math is exact f32 VPU).
    hp = jax.lax.Precision.HIGHEST
    h = jnp.maximum(jnp.dot(x, w1, precision=hp) + b1, 0.0)
    return jnp.dot(h, w2, precision=hp) + b2


if __name__ == "__main__":
    n_feature, n_hidden, n_output = 1, 32, 1

    key = jax.random.PRNGKey(0)
    w1, b1, w2, b2 = init_params(key, n_feature, n_hidden, n_output)

    # Same input as the torch script: linspace(-1, 1, 100) unsqueezed to (100, 1).
    x = jnp.linspace(-1.0, 1.0, 100, dtype=jnp.float32).reshape(100, 1)

    out = jax.block_until_ready(net_forward(x, w1, b1, w2, b2))
    ref = net_reference(x, w1, b1, w2, b2)
    assert out.shape == (100, n_output)
    assert jnp.allclose(out, ref, atol=1e-5, rtol=1e-5)

    # Larger batch to exercise the multi-tile grid path (grid > 1, padded batch).
    x_big = jax.random.normal(jax.random.PRNGKey(1), (1000, n_feature), jnp.float32)
    out_big = jax.block_until_ready(net_forward(x_big, w1, b1, w2, b2))
    ref_big = net_reference(x_big, w1, b1, w2, b2)
    assert out_big.shape == (1000, n_output)
    assert jnp.allclose(out_big, ref_big, atol=1e-5, rtol=1e-5)

    print("KERNEL_OK")
</pallas_src>

<mosaic_0001>
module attributes {stable_mosaic.version = 11 : i64} {
  func.func @mlp_kernel(%arg0: i32, %arg1: memref<1x128xf32, #tpu.memory_space<vmem>>, %arg2: memref<32x1xf32, #tpu.memory_space<vmem>>, %arg3: memref<32x1xf32, #tpu.memory_space<vmem>>, %arg4: memref<32x1xf32, #tpu.memory_space<vmem>>, %arg5: memref<1x1xf32, #tpu.memory_space<vmem>>, %arg6: memref<1x128xf32, #tpu.memory_space<vmem>>) attributes {dimension_semantics = [#tpu.dimension_semantics<parallel>], iteration_bounds = array<i64: 1>, scalar_prefetch = 0 : i64, scratch_operands = 0 : i64, tpu.core_type = #tpu.core_type<tc>, window_params = [{transform_indices = @transform_0, window_bounds = array<i64: 1, 128>}, {pipeline_mode = #tpu.pipeline_mode<synchronous>, transform_indices = @transform_1, window_bounds = array<i64: 32, 1>}, {pipeline_mode = #tpu.pipeline_mode<synchronous>, transform_indices = @transform_2, window_bounds = array<i64: 32, 1>}, {pipeline_mode = #tpu.pipeline_mode<synchronous>, transform_indices = @transform_3, window_bounds = array<i64: 32, 1>}, {pipeline_mode = #tpu.pipeline_mode<synchronous>, transform_indices = @transform_4, window_bounds = array<i64: 1, 1>}, {transform_indices = @transform_5, window_bounds = array<i64: 1, 128>}]} {
    %c0 = arith.constant 0 : index
    %c0_0 = arith.constant 0 : index
    %0 = vector.load %arg1[%c0, %c0_0] : memref<1x128xf32, #tpu.memory_space<vmem>>, vector<1x128xf32>
    %c0_1 = arith.constant 0 : index
    %c0_2 = arith.constant 0 : index
    %1 = vector.load %arg2[%c0_1, %c0_2] : memref<32x1xf32, #tpu.memory_space<vmem>>, vector<32x1xf32>
    %c0_3 = arith.constant 0 : index
    %c0_4 = arith.constant 0 : index
    %2 = vector.load %arg3[%c0_3, %c0_4] : memref<32x1xf32, #tpu.memory_space<vmem>>, vector<32x1xf32>
    %3 = vector.broadcast %1 : vector<32x1xf32> to vector<32x128xf32>
    %4 = vector.broadcast %0 : vector<1x128xf32> to vector<32x128xf32>
    %5 = arith.mulf %3, %4 : vector<32x128xf32>
    %6 = vector.broadcast %2 : vector<32x1xf32> to vector<32x128xf32>
    %7 = arith.addf %6, %5 : vector<32x128xf32>
    %cst = arith.constant 0.000000e+00 : f32
    %8 = vector.broadcast %cst : f32 to vector<32x128xf32>
    %9 = arith.maximumf %7, %8 : vector<32x128xf32>
    %c0_5 = arith.constant 0 : index
    %c0_6 = arith.constant 0 : index
    %10 = vector.load %arg4[%c0_5, %c0_6] : memref<32x1xf32, #tpu.memory_space<vmem>>, vector<32x1xf32>
    %c0_7 = arith.constant 0 : index
    %c0_8 = arith.constant 0 : index
    %11 = vector.load %arg5[%c0_7, %c0_8] : memref<1x1xf32, #tpu.memory_space<vmem>>, vector<1x1xf32>
    %12 = vector.broadcast %10 : vector<32x1xf32> to vector<32x128xf32>
    %13 = arith.mulf %9, %12 : vector<32x128xf32>
    %cst_9 = arith.constant dense<0.000000e+00> : vector<128xf32>
    %14 = vector.multi_reduction <add>, %13, %cst_9 [0] : vector<32x128xf32> to vector<128xf32>
    %15 = vector.shape_cast %14 : vector<128xf32> to vector<1x128xf32>
    %16 = vector.broadcast %11 : vector<1x1xf32> to vector<1x128xf32>
    %17 = arith.addf %15, %16 : vector<1x128xf32>
    %c0_10 = arith.constant 0 : index
    %c0_11 = arith.constant 0 : index
    %18 = vector.load %arg6[%c0_10, %c0_11] : memref<1x128xf32, #tpu.memory_space<vmem>>, vector<1x128xf32>
    tpu.vector_store %arg6[%c0_10, %c0_11], %17 {strides = array<i32>} : memref<1x128xf32, #tpu.memory_space<vmem>>, vector<1x128xf32>,
    return
  }
  func.func @transform_0(%arg0: i32) -> (i32, i32) {
    %c0_i32 = arith.constant 0 : i32
    %c0_i32_0 = arith.constant 0 : i32
    return %c0_i32, %arg0 : i32, i32
  }
  func.func @transform_1(%arg0: i32) -> (i32, i32) {
    %c0_i32 = arith.constant 0 : i32
    %c0_i32_0 = arith.constant 0 : i32
    %c0_i32_1 = arith.constant 0 : i32
    return %c0_i32, %c0_i32_0 : i32, i32
  }
  func.func @transform_2(%arg0: i32) -> (i32, i32) {
    %c0_i32 = arith.constant 0 : i32
    %c0_i32_0 = arith.constant 0 : i32
    %c0_i32_1 = arith.constant 0 : i32
    return %c0_i32, %c0_i32_0 : i32, i32
  }
  func.func @transform_3(%arg0: i32) -> (i32, i32) {
    %c0_i32 = arith.constant 0 : i32
    %c0_i32_0 = arith.constant 0 : i32
    %c0_i32_1 = arith.constant 0 : i32
    return %c0_i32, %c0_i32_0 : i32, i32
  }
  func.func @transform_4(%arg0: i32) -> (i32, i32) {
    %c0_i32 = arith.constant 0 : i32
    %c0_i32_0 = arith.constant 0 : i32
    %c0_i32_1 = arith.constant 0 : i32
    return %c0_i32, %c0_i32_0 : i32, i32
  }
  func.func @transform_5(%arg0: i32) -> (i32, i32) {
    %c0_i32 = arith.constant 0 : i32
    %c0_i32_0 = arith.constant 0 : i32
    return %c0_i32, %arg0 : i32, i32
  }
}

</mosaic_0001>

<bundles_post_ra>
// kernel: tpu_custom_call.1
= control target key start
LH: loop header
LB: loop body
LE: loop exit
PB: predicated region body
PF: predicated region fallthrough
CT: control target
= control target key end

     0   :  { %s268_s0 = inlined_call_operand.vmem [shape: f32[1,128], index: 0, kind: input, shape index: {}]   ;;  %s269_s1 = inlined_call_operand.vmem [shape: f32[32,1], index: 1, kind: input, shape index: {}]   ;;  %s270_s2 = inlined_call_operand.vmem [shape: f32[32,1], index: 2, kind: input, shape index: {}]   ;;  %s271_s3 = inlined_call_operand.vmem [shape: f32[32,1], index: 3, kind: input, shape index: {}]   ;;  %s272_s4 = inlined_call_operand.<no memory space> [shape: f32[1,1], index: 4, kind: input, shape index: {}]   ;;  %s273_s5 = inlined_call_operand.hbm [shape: f32[1,128], index: 5, kind: output, shape index: {}]  }
   0x1   :  { %v10_v0 = vstv %s272_s4 }
   0x2   :  { %11 = vst [vmem:[#allocation2] sm:$0x1] %v10_v0 }
   0x3   :  { %v26_v1 = vld [vmem:[%s269_s1 + $0x10] sm:$0xff]  ;;  %v24_v2 = vld [vmem:[%s269_s1] sm:$0xff]  ;;  %v182_v3 = vmov 0   ;;  %v25_v5 = vld [vmem:[%s269_s1 + $0x8] sm:$0xff] }
   0x4   :  { %157 = vset.pattern.permute.xlu1 %v182_v3  ;;  %156 = vset.pattern.permute.xlu0 %v182_v3  ;;  %v28_v4 = vld [vmem:[%s270_s2] sm:$0xff] }
   0x5   :  { %44 = vperm.xlu1 %157, %v26_v1   ;;  %34 = vperm.xlu0 %156, %v24_v2  }
   0x6   :  { %12 = vsyncpa [#allocation4], 0  ;;  %v27_v6 = vld [vmem:[%s269_s1 + $0x18] sm:$0xff]  ;;  %v29_v7 = vld [vmem:[%s270_s2 + $0x8] sm:$0xff]  ;;  %v133_v47 = vlaneseq }
   0x7   :  { %v31_v8 = vld [vmem:[%s270_s2 + $0x18] sm:$0xff]  ;;  %v30_v9 = vld [vmem:[%s270_s2 + $0x10] sm:$0xff]  ;;  %v91_v10 = vld [vmem:[%s271_s3 + $0x8] sm:$0xff] }
   0x8   :  { %v90_v11 = vld [vmem:[%s271_s3] sm:$0xff]  ;;  %v93_v12 = vld [vmem:[%s271_s3 + $0x18] sm:$0xff]  ;;  %v92_v13 = vld [vmem:[%s271_s3 + $0x10] sm:$0xff]  ;;  %v134_v50 = vshrl.u32 %v133_v47, 7 }
   0x9   :  { %64 = vperm.xlu1 %157, %v28_v4   ;;  %39 = vperm.xlu0 %156, %v25_v5   ;;  %v94_v14 = vld [vmem:[#allocation2] sm:$0x1] }
   0xa   :  { %v153_v19 = vld [vmem:[%s268_s0] ss:$0 sm:$0xff]  ;;  %v135_v52 = vsub.s32 0, %v134_v50  ;;  %s183_s0 = smov [#allocation3]  }
   0xb   :  { %s145_s3 = sshll.u32 %s183_s0, 4  ;;  %s146_s3 = int_to_ptr.vmem [resolvable:$true] %s145_s3 }
   0xc   :  { %s158_s18 = scalar_lea.vmem %s146_s3, 16  ;;  %s162_s19 = scalar_lea.vmem %s146_s3, 32 }
   0xd   :  { %49 = vperm.xlu1 %157, %v27_v6   ;;  %69 = vperm.xlu0 %156, %v29_v7   ;;  %p159_p0 = scmp.ne.s32.totalorder %s146_s3, %s158_s18  ;;  %p163_p1 = scmp.lt.s32.totalorder %s146_s3, %s146_s3 }
   0xe   :  { %p164_p2 = scmp.lt.s32.totalorder %s162_s19, %s158_s18 }
  0x10   :  { %p165_p3 = por %p164_p2, %p163_p1 }
  0x11   :  { %79 = vperm.xlu1 %157, %v31_v8   ;;  %74 = vperm.xlu0 %156, %v30_v9  }
  0x12   :  { %p166_p4 = pnand %p165_p3, %p159_p0 }
  0x15   :  { %102 = vperm.xlu1 %157, %v91_v10   ;;  %97 = vperm.xlu0 %156, %v90_v11  }
  0x19   :  { %112 = vperm.xlu1 %157, %v93_v12   ;;  %107 = vperm.xlu0 %156, %v92_v13  }
  0x1d   :  { %130 = vperm.xlu0 %156, %v94_v14  }
  0x84   :  { %v45_v15 = vpop.permute.xlu1 %44  ;;  %v35_v16 = vpop.permute.xlu0 %34 }
  0x85   :  { %v58_v22 = vmul.f32 %v153_v19, %v35_v16  ;;  %v60_v28 = vmul.f32 %v153_v19, %v45_v15 }
  0x88   :  { %v65_v17 = vpop.permute.xlu1 %64  ;;  %v40_v18 = vpop.permute.xlu0 %39 }
  0x89   :  { %v59_v23 = vmul.f32 %v153_v19, %v40_v18  ;;  %v82_v24 = vadd.f32 %v65_v17, %v58_v22 }
  0x8b   :  { %v86_v29 = vmax.f32 %v82_v24, 0.0 }
  0x8c   :  { %v50_v20 = vpop.permute.xlu1 %49  ;;  %v70_v21 = vpop.permute.xlu0 %69 }
  0x8d   :  { %v83_v25 = vadd.f32 %v70_v21, %v59_v23  ;;  %v61_v30 = vmul.f32 %v153_v19, %v50_v20 }
  0x8f   :  { %v87_v31 = vmax.f32 %v83_v25, 0.0 }
  0x90   :  { %v80_v26 = vpop.permute.xlu1 %79  ;;  %v75_v27 = vpop.permute.xlu0 %74 }
  0x91   :  { %v84_v32 = vadd.f32 %v75_v27, %v60_v28  ;;  %v85_v35 = vadd.f32 %v80_v26, %v61_v30 }
  0x93   :  { %v88_v38 = vmax.f32 %v84_v32, 0.0  ;;  %v89_v41 = vmax.f32 %v85_v35, 0.0 }
  0x94   :  { %v103_v33 = vpop.permute.xlu1 %102  ;;  %v98_v34 = vpop.permute.xlu0 %97 }
  0x95   :  { %v116_v36 = vmul.f32 %v103_v33, %v87_v31  ;;  %v115_v37 = vmul.f32 %v98_v34, %v86_v29 }
  0x97   :  { %v119_v42 = vadd.f32 %v116_v36, %v115_v37 }
  0x98   :  { %v113_v39 = vpop.permute.xlu1 %112  ;;  %v108_v40 = vpop.permute.xlu0 %107 }
  0x99   :  { %v117_v43 = vmul.f32 %v108_v40, %v88_v38  ;;  %v118_v44 = vmul.f32 %v113_v39, %v89_v41 }
  0x9b   :  { %v120_v45 = vadd.f32 %v119_v42, %v117_v43 }
  0x9c   :  { %v131_v54 = vpop.permute.xlu0 %130 }
  0x9d   :  { %v121_v46 = vadd.f32 %v120_v45, %v118_v44  ;;  %v136_v56 = vrot.slane %v131_v54, %v135_v52 }
  0x9f   :  { %v122_v48 = vrot.slane %v121_v46, 4 }
  0xa1   :  { %v123_v49 = vadd.f32 %v122_v48, %v121_v46 }
  0xa3   :  { %v124_v51 = vrot.slane %v123_v49, 2 }
  0xa5   :  { %v125_v53 = vadd.f32 %v124_v51, %v123_v49 }
  0xa7   :  { %v126_v55 = vrot.slane %v125_v53, 1 }
  0xa9   :  { %v127_v57 = vadd.f32 %v126_v55, %v125_v53 }
  0xab   :  { %v137_v58 = vadd.f32 %v136_v56, %v127_v57 }
  0xad   :  { %138 = vst [vmem:[#allocation3] sm:$0x1] %v137_v58 }
  0xae   :  { %169 = shalt.err (!%p166_p4)
}
  0xaf   :  { %s170_s22 = scalar_lea.hbm %s273_s5, 16 }
  0xb0   :  { %p171_p5 = scmp.ne.s32.totalorder %s273_s5, %s170_s22  ;;  %p174_p6 = scmp.lt.u32.totalorder %s170_s22, %s273_s5 }
  0xb2   :  { %p176_p7 = pnand %p174_p6, %p171_p5 }
  0xb4   :  { %179 = shalt.err (!%p176_p7)
}
  0xb5   :  { %148 = dma.vmem_to_hbm [thread:$0]  %s146_s3, 16, %s273_s5, [#allocation4]  }
  0xb6   :  { %180 = dma.done.wait [#allocation4], 16  }
  0xb7   :  { %181 = vsyncadd [#allocation4], 4294967280 }
  0xb8   :  { %152 = vsyncpa [#allocation4], 1 }

</bundles_post_ra>
